<compile_context>
chip_gen: v5e
topology: v5e:2x2
jax: 0.10.0
libtpu: 0.0.40
codegen_flags: <defaults>
</compile_context>

<pallas_src>
import jax
import jax.numpy as jnp
from jax.experimental import pallas as pl
from jax.experimental.pallas import tpu as pltpu


def _round_up(x, m):
    return ((x + m - 1) // m) * m


def linear_sub_relu_kernel(x_ref, w_ref, o_ref):
    # x_ref: (TBR, 128)   w_ref: (128, 256)   o_ref: (TBR, 256)   (all lane-dense)
    acc = jnp.dot(x_ref[...], w_ref[...], preferred_element_type=jnp.float32)
    acc = acc - jnp.float32(0.1)
    o_ref[...] = jnp.maximum(acc, jnp.float32(0.0)).astype(o_ref.dtype)


def linear_sub_relu(x, w, *, tbr_default=8192, tbr_min=2048):
    """relu(x @ w.T - 0.1).  x: (B, 16) f32, w: (32, 16) f32 (PyTorch layout)."""
    B, K = x.shape
    N, K2 = w.shape
    assert K == K2
    assert 128 % K == 0, "lane-dense repack needs K to divide 128"
    group = 128 // K                   # original rows packed per lane-dense row (8)
    n_big = group * N                  # 256 for N=32
    assert n_big % 128 == 0, "lane-dense output needs group*N to be a multiple of 128"

    # Pad batch only to a multiple of `group` (needed for the free row-major
    # reshape).  No pad-to-tile: partial final grid blocks are clipped by Pallas.
    b_pad = _round_up(B, group)
    if b_pad != B:
        x = jnp.pad(x, ((0, b_pad - B), (0, 0)))
    rows = b_pad // group

    # Lane-dense views.
    x_big = x.reshape(rows, group * K)                      # free reshape: (rows, 128)
    w_big = jnp.kron(jnp.eye(group, dtype=w.dtype), w.T)    # (128, 256) block-diagonal

    # Tile sizing (in lane-dense rows).  TBR=8192 == 64K original rows:
    # double-buffered x (8 MiB) + out (16 MiB) + resident weight (<1 MiB) fits
    # comfortably under v7x's 64 MiB VMEM.  For big inputs keep >=4 grid steps
    # so both v7x TensorCores stay busy, never dropping below tbr_min so the
    # ~0.35us per-step grid overhead stays amortized.
    if rows <= tbr_default:
        tbr = rows
    else:
        tbr = min(tbr_default, max(tbr_min, _round_up(-(-rows // 4), 8)))

    grid = (pl.cdiv(rows, tbr),)

    out_big = pl.pallas_call(
        linear_sub_relu_kernel,
        out_shape=jax.ShapeDtypeStruct((rows, n_big), x.dtype),
        grid_spec=pl.GridSpec(
            grid=grid,
            in_specs=[
                # streamed lane-dense batch tiles of x
                pl.BlockSpec((tbr, group * K), lambda i: (i, 0)),
                # whole weight; constant index_map -> stays resident, no per-step re-fetch
                pl.BlockSpec((group * K, n_big), lambda i: (0, 0)),
            ],
            out_specs=pl.BlockSpec((tbr, n_big), lambda i: (i, 0)),
        ),
        compiler_params=pltpu.CompilerParams(
            dimension_semantics=("parallel",),
            vmem_limit_bytes=48 * 1024 * 1024,
        ),
    )(x_big, w_big)

    out = out_big.reshape(b_pad, N)
    return out[:B] if b_pad != B else out


if __name__ == "__main__":
    key = jax.random.PRNGKey(0)
    kx, kw, kx2 = jax.random.split(key, 3)

    K, N = 16, 32
    # deterministic "Linear" weight, PyTorch layout (out_features, in_features)
    w = jax.random.normal(kw, (N, K), dtype=jnp.float32) * (1.0 / jnp.sqrt(K))

    # small batch consistent with the module (Linear expects last dim 16)
    x = jax.random.normal(kx, (8, K), dtype=jnp.float32)
    out = linear_sub_relu(x, w)
    jax.block_until_ready(out)
    ref = jnp.maximum(x @ w.T - 0.1, 0.0)
    assert out.shape == (8, N)
    assert jnp.allclose(out, ref, atol=1e-5, rtol=1e-5)

    # non-multiple-of-8 batch exercises the pad-to-8 + slice path
    x2 = jax.random.normal(kx2, (37, K), dtype=jnp.float32)
    out2 = linear_sub_relu(x2, w)
    jax.block_until_ready(out2)
    ref2 = jnp.maximum(x2 @ w.T - 0.1, 0.0)
    assert out2.shape == (37, N)
    assert jnp.allclose(out2, ref2, atol=1e-5, rtol=1e-5)

    print("KERNEL_OK")
</pallas_src>

<mosaic_0001>
module attributes {stable_mosaic.version = 11 : i64} {
  func.func @linear_sub_relu_kernel(%arg0: i32, %arg1: memref<1x128xf32, #tpu.memory_space<vmem>>, %arg2: memref<128x256xf32, #tpu.memory_space<vmem>>, %arg3: memref<1x256xf32, #tpu.memory_space<vmem>>) attributes {dimension_semantics = [#tpu.dimension_semantics<parallel>], iteration_bounds = array<i64: 1>, scalar_prefetch = 0 : i64, scratch_operands = 0 : i64, tpu.core_type = #tpu.core_type<tc>, window_params = [{transform_indices = @transform_0, window_bounds = array<i64: 1, 128>}, {pipeline_mode = #tpu.pipeline_mode<synchronous>, transform_indices = @transform_1, window_bounds = array<i64: 128, 256>}, {transform_indices = @transform_2, window_bounds = array<i64: 1, 256>}]} {
    %c0 = arith.constant 0 : index
    %c0_0 = arith.constant 0 : index
    %0 = vector.load %arg1[%c0, %c0_0] : memref<1x128xf32, #tpu.memory_space<vmem>>, vector<1x128xf32>
    %c0_1 = arith.constant 0 : index
    %c0_2 = arith.constant 0 : index
    %1 = vector.load %arg2[%c0_1, %c0_2] : memref<128x256xf32, #tpu.memory_space<vmem>>, vector<128x256xf32>
    %cst = arith.constant dense<0.000000e+00> : vector<1x256xf32>
    %2 = tpu.matmul %0, %1, %cst {dimension_numbers = #tpu.dot_dimension_numbers<[1], [0], [0], [1], [0, 0, 1, 1], [], []>} : vector<1x128xf32>, vector<128x256xf32>, vector<1x256xf32> -> vector<1x256xf32>
    %cst_3 = arith.constant 1.000000e-01 : f32
    %3 = vector.broadcast %cst_3 : f32 to vector<1x256xf32>
    %4 = arith.subf %2, %3 : vector<1x256xf32>
    %cst_4 = arith.constant 0.000000e+00 : f32
    %5 = vector.broadcast %cst_4 : f32 to vector<1x256xf32>
    %6 = arith.maximumf %4, %5 : vector<1x256xf32>
    %c0_5 = arith.constant 0 : index
    %c0_6 = arith.constant 0 : index
    %7 = vector.load %arg3[%c0_5, %c0_6] : memref<1x256xf32, #tpu.memory_space<vmem>>, vector<1x256xf32>
    tpu.vector_store %arg3[%c0_5, %c0_6], %6 {strides = array<i32>} : memref<1x256xf32, #tpu.memory_space<vmem>>, vector<1x256xf32>,
    return
  }
  func.func @transform_0(%arg0: i32) -> (i32, i32) {
    %c0_i32 = arith.constant 0 : i32
    %c0_i32_0 = arith.constant 0 : i32
    return %arg0, %c0_i32 : i32, i32
  }
  func.func @transform_1(%arg0: i32) -> (i32, i32) {
    %c0_i32 = arith.constant 0 : i32
    %c0_i32_0 = arith.constant 0 : i32
    %c0_i32_1 = arith.constant 0 : i32
    return %c0_i32, %c0_i32_0 : i32, i32
  }
  func.func @transform_2(%arg0: i32) -> (i32, i32) {
    %c0_i32 = arith.constant 0 : i32
    %c0_i32_0 = arith.constant 0 : i32
    return %arg0, %c0_i32 : i32, i32
  }
}

</mosaic_0001>

<bundles_post_ra>
// kernel: tpu_custom_call.1
= control target key start
LH: loop header
LB: loop body
LE: loop exit
PB: predicated region body
PF: predicated region fallthrough
CT: control target
= control target key end

     0   :  { %7 = vsyncpa [#allocation3], 0  ;;  %s262_s0 = inlined_call_operand.hbm [shape: f32[1,128], index: 0, kind: input, shape index: {}]   ;;  %s263_s1 = inlined_call_operand.hbm [shape: f32[128,256], index: 1, kind: input, shape index: {}]   ;;  %s264_s2 = inlined_call_operand.hbm [shape: f32[1,256], index: 2, kind: output, shape index: {}]  }
   0x1   :  { %8 = vsyncpa [#allocation6], 0 }
   0x2   :  { %9 = vsyncpa [#allocation4], 0  ;;  %s15_s11 = sshll.u32 %s262_s0, 4  ;;  %s233_s12 = smov [#allocation2]   ;;  %s16_s11 = int_to_ptr.hbm [resolvable:$true] %s15_s11 }
   0x3   :  { %s17_s13 = sshll.u32 %s233_s12, 4  ;;  %s25_s16 = sshll.u32 %s263_s1, 4  ;;  %s18_s13 = int_to_ptr.vmem [resolvable:$true] %s17_s13  ;;  %s26_s16 = int_to_ptr.hbm [resolvable:$true] %s25_s16 }
   0x4   :  { %20 = dma.hbm_to_vmem [thread:$0]  %s16_s11, 16, %s18_s13, [#allocation3]  }
   0x5   :  { %s234_s17 = smov [#allocation5]   ;;  %s235_s19 = smov 256  }
   0x6   :  { %s27_s18 = sshll.u32 %s234_s17, 4  ;;  %s236_s20 = smov 16   ;;  %s28_s18 = int_to_ptr.vmem [resolvable:$true] %s27_s18 }
   0x7   :  { %33 = dma.hbm_to_vmem [thread:$0]  %s26_s16, 4096, %s28_s18, [#allocation6], %s235_s19, %s235_s19, %s236_s20  }
   0x8   :  { %227 = dma.done.wait [#allocation3], 16  }
   0x9   :  { %228 = vsyncadd [#allocation3], 4294967280 }
   0xa   :  { %229 = dma.done.wait [#allocation6], 4096  }
   0xb   :  { %230 = vsyncadd [#allocation6], 4294963200  ;;  %v74_v0 = vld [vmem:[#allocation5 + $0xf8] sm:$0xff]  ;;  %v73_v1 = vld [vmem:[#allocation5 + $0xf0] sm:$0xff]  ;;  %v125_v37 = vlaneseq  ;;  %s237_s0 = smov [#allocation7]   ;;  %s137_s23 = sshll.u32 %s264_s2, 4  ;;  %s138_s23 = int_to_ptr.hbm [resolvable:$true] %s137_s23 }
   0xc   :  { %v72_v2 = vld [vmem:[#allocation5 + $0xe8] sm:$0xff]  ;;  %95 = vmatpush.msra.mxu1 %v74_v0  ;;  %75 = vmatpush.msra.mxu0 %v73_v1  ;;  %v71_v3 = vld [vmem:[#allocation5 + $0xe0] sm:$0xff]  ;;  %v70_v4 = vld [vmem:[#allocation5 + $0xd8] sm:$0xff]  ;;  %s135_s1 = sshll.u32 %s237_s0, 4  ;;  %vm122_vm0 = vcmask 1040384   ;;  %s136_s1 = int_to_ptr.vmem [resolvable:$true] %s135_s1 }
   0xd   :  { %v69_v5 = vld [vmem:[#allocation5 + $0xd0] sm:$0xff]  ;;  %v68_v6 = vld [vmem:[#allocation5 + $0xc8] sm:$0xff]  ;;  %v67_v7 = vld [vmem:[#allocation5 + $0xc0] sm:$0xff]  ;;  %vm127_vm1 = vcmp.lt.s32.totalorder %v125_v37, 256 }
   0xe   :  { %96 = vmatpush.msra.mxu1 %v72_v2  ;;  %76 = vmatpush.msra.mxu0 %v71_v3  ;;  %v66_v8 = vld [vmem:[#allocation5 + $0xb8] sm:$0xff]  ;;  %v65_v9 = vld [vmem:[#allocation5 + $0xb0] sm:$0xff]  ;;  %v64_v10 = vld [vmem:[#allocation5 + $0xa8] sm:$0xff] }
   0xf   :  { %v63_v11 = vld [vmem:[#allocation5 + $0xa0] sm:$0xff]  ;;  %v62_v12 = vld [vmem:[#allocation5 + $0x98] sm:$0xff]  ;;  %v61_v13 = vld [vmem:[#allocation5 + $0x90] sm:$0xff] }
  0x10   :  { %97 = vmatpush.msra.mxu1 %v70_v4  ;;  %77 = vmatpush.msra.mxu0 %v69_v5  ;;  %v60_v14 = vld [vmem:[#allocation5 + $0x88] sm:$0xff]  ;;  %v59_v15 = vld [vmem:[#allocation5 + $0x80] sm:$0xff]  ;;  %v58_v16 = vld [vmem:[#allocation5 + $0x78] sm:$0xff] }
  0x11   :  { %v57_v17 = vld [vmem:[#allocation5 + $0x70] sm:$0xff]  ;;  %v56_v18 = vld [vmem:[#allocation5 + $0x68] sm:$0xff]  ;;  %v55_v19 = vld [vmem:[#allocation5 + $0x60] sm:$0xff] }
  0x12   :  { %98 = vmatpush.msra.mxu1 %v68_v6  ;;  %78 = vmatpush.msra.mxu0 %v67_v7  ;;  %v54_v20 = vld [vmem:[#allocation5 + $0x58] sm:$0xff]  ;;  %v53_v21 = vld [vmem:[#allocation5 + $0x50] sm:$0xff]  ;;  %v52_v22 = vld [vmem:[#allocation5 + $0x48] sm:$0xff] }
  0x13   :  { %v51_v23 = vld [vmem:[#allocation5 + $0x40] sm:$0xff]  ;;  %v50_v24 = vld [vmem:[#allocation5 + $0x38] sm:$0xff]  ;;  %v49_v25 = vld [vmem:[#allocation5 + $0x30] sm:$0xff] }
  0x14   :  { %99 = vmatpush.msra.mxu1 %v66_v8  ;;  %79 = vmatpush.msra.mxu0 %v65_v9  ;;  %v48_v26 = vld [vmem:[#allocation5 + $0x28] sm:$0xff]  ;;  %v47_v27 = vld [vmem:[#allocation5 + $0x20] sm:$0xff]  ;;  %v46_v28 = vld [vmem:[#allocation5 + $0x18] sm:$0xff] }
  0x15   :  { %v45_v29 = vld [vmem:[#allocation5 + $0x10] sm:$0xff]  ;;  %v44_v30 = vld [vmem:[#allocation5 + $0x8] sm:$0xff]  ;;  %v43_v31 = vld [vmem:[#allocation5] sm:$0xff] }
  0x16   :  { %100 = vmatpush.msra.mxu1 %v64_v10  ;;  %80 = vmatpush.msra.mxu0 %v63_v11  ;;  %v42_v32 = vld [vmem:[#allocation2] sm:$0x1] }
  0x18   :  { %101 = vmatpush.msra.mxu1 %v62_v12  ;;  %81 = vmatpush.msra.mxu0 %v61_v13 }
  0x1a   :  { %102 = vmatpush.msra.mxu1 %v60_v14  ;;  %82 = vmatpush.msra.mxu0 %v59_v15 }
  0x1c   :  { %103 = vmatpush.msra.mxu1 %v58_v16  ;;  %83 = vmatpush.msra.mxu0 %v57_v17 }
  0x1e   :  { %104 = vmatpush.msra.mxu1 %v56_v18  ;;  %84 = vmatpush.msra.mxu0 %v55_v19 }
  0x20   :  { %105 = vmatpush.msra.mxu1 %v54_v20  ;;  %85 = vmatpush.msra.mxu0 %v53_v21 }
  0x22   :  { %106 = vmatpush.msra.mxu1 %v52_v22  ;;  %86 = vmatpush.msra.mxu0 %v51_v23 }
  0x24   :  { %107 = vmatpush.msra.mxu1 %v50_v24  ;;  %87 = vmatpush.msra.mxu0 %v49_v25 }
  0x26   :  { %108 = vmatpush.msra.mxu1 %v48_v26  ;;  %88 = vmatpush.msra.mxu0 %v47_v27 }
  0x28   :  { %109 = vmatpush.msra.mxu1 %v46_v28  ;;  %89 = vmatpush.msra.mxu0 %v45_v29 }
  0x2a   :  { %110 = vmatpush.msra.mxu1 %v44_v30  ;;  %90 = vmatpush.msra.mxu0 %v43_v31 }
  0x2b   :  { %111 = vmatmul.f32.vlgmr.msra.gmra.mxu1 %v42_v32  ;;  %91 = vmatmul.f32.vlgmr.msra.gmra.mxu0 %v42_v32 }
  0xa8   :  { %v112_v33 = vpop.f32.mrf.mxu1  ;;  %v92_v34 = vpop.f32.mrf.mxu0 }
  0xa9   :  { %v149_v35 = vadd.f32 -0.1, %v112_v33  ;;  %v148_v36 = vadd.f32 -0.1, %v92_v34 }
  0xab   :  { %v118_v38 = vmax.f32 %v149_v35, 0.0  ;;  %v117_v39 = vmax.f32 %v148_v36, 0.0 }
  0xad   :  { %v121_v40 = vrot.slane %v118_v38, 7 }
  0xaf   :  { %v123_v41 = vsel %vm122_vm0, %v117_v39, %v121_v40 }
  0xb0   :  { %129 = vst.msk [vmem:[#allocation7] sm:$0x3] %vm127_vm1, %v123_v41 }
  0xb1   :  { %140 = dma.vmem_to_hbm [thread:$0]  %s136_s1, 32, %s138_s23, [#allocation4]  }
  0xb2   :  { %231 = dma.done.wait [#allocation4], 32  }
  0xb3   :  { %232 = vsyncadd [#allocation4], 4294967264 }
  0xb4   :  { %145 = vsyncpa [#allocation3], 1 }
  0xb5   :  { %146 = vsyncpa [#allocation6], 1 }
  0xb6   :  { %147 = vsyncpa [#allocation4], 1 }

</bundles_post_ra>
